<compile_context>
chip_gen: v6e
topology: v6e:2x2x1
jax: 0.10.0
libtpu: 0.0.40
codegen_flags: <defaults>
</compile_context>

<pallas_src>
import jax
import jax.numpy as jnp
from jax.experimental import pallas as pl
from jax.experimental.pallas import tpu as pltpu


# ---------------------------------------------------------------------------
# Fused SpatialAttention kernel:  out = x * sigmoid(sum_c x[c] * w[c])
# ---------------------------------------------------------------------------
def _spatial_attention_kernel(x_ref, w_ref, o_ref):
    # x_ref: (1, C, T)  -- one batch element, full channel dim, T spatial lanes
    # w_ref: (C, 1)     -- squeeze-conv weight (bias=False)
    x = x_ref[0]                                        # (C, T)
    w = w_ref[...]                                      # (C, 1), broadcasts over lanes
    z = jnp.sum(x * w, axis=0, keepdims=True)           # (1, T) channel reduction (VPU/XLU)
    gate = 1.0 / (1.0 + jnp.exp(-z))                    # sigmoid (exp on EUP)
    o_ref[0] = x * gate                                 # broadcast gate over channels


def _pick_spatial_tile(hw, n_batch):
    """Lane tile over H*W: multiple of 128, big enough to amortize per-step
    overhead, small enough to give >=~8 grid steps for pipelining / 2 TCs."""
    if hw % 128 != 0:
        # TODO(synk): odd H*W -> single full-extent lane block (no masked-tail tiling yet).
        return hw
    t = min(hw, 2048)
    while t > 128 and (hw % t != 0 or n_batch * (hw // t) < 8):
        t -= 128
    return t


def spatial_attention(x_nchw, w_conv):
    """SpatialAttention.forward.

    x_nchw : (N, C, H, W)  activations (any float dtype; computed in f32)
    w_conv : (1, C, 1, 1)  Conv2d(dim, 1, 1, bias=False) weight, torch layout
    returns: (N, C, H, W)  x * sigmoid(conv1x1(x))
    """
    N, C, H, W = x_nchw.shape
    HW = H * W
    x = x_nchw.reshape(N, C, HW).astype(jnp.float32)
    # Hoisted weight preprocessing (done once, outside the kernel): (1,C,1,1) -> (C,1).
    w = w_conv.reshape(C, 1).astype(jnp.float32)

    T = _pick_spatial_tile(HW, N)
    grid = (N, HW // T)

    y = pl.pallas_call(
        _spatial_attention_kernel,
        out_shape=jax.ShapeDtypeStruct((N, C, HW), jnp.float32),
        grid=grid,
        in_specs=[
            pl.BlockSpec((1, C, T), lambda n, t: (n, 0, t)),   # full C needed for reduction
            pl.BlockSpec((C, 1), lambda n, t: (0, 0)),         # tiny weight, resident
        ],
        out_specs=pl.BlockSpec((1, C, T), lambda n, t: (n, 0, t)),
        compiler_params=pltpu.CompilerParams(
            dimension_semantics=("parallel", "parallel"),
            vmem_limit_bytes=64 * 1024 * 1024,
        ),
    )(x, w)
    return y.reshape(N, C, H, W)


# ---------------------------------------------------------------------------
if __name__ == "__main__":
    N, C, H, W = 2, 4, 16, 16

    key = jax.random.PRNGKey(0)
    kx, kw = jax.random.split(key)
    x = jax.random.normal(kx, (N, C, H, W), dtype=jnp.float32)
    # nn.Conv2d(dim, 1, kernel_size=1, bias=False) weight, torch layout (1, C, 1, 1)
    w = 0.1 * jax.random.normal(kw, (1, C, 1, 1), dtype=jnp.float32)

    out = spatial_attention(x, w)
    out = jax.block_until_ready(out)

    # Pure-JAX reference of the PyTorch forward.
    z_ref = jnp.einsum("nchw,c->nhw", x, w.reshape(C))[:, None, :, :]
    ref = x * jax.nn.sigmoid(z_ref)

    assert out.shape == (N, C, H, W), out.shape
    assert bool(jnp.all(jnp.isfinite(out)))
    assert bool(jnp.allclose(out, ref, atol=1e-5, rtol=1e-5)), float(jnp.max(jnp.abs(out - ref)))
    print("KERNEL_OK")
</pallas_src>

<mosaic_0001>
module attributes {stable_mosaic.version = 11 : i64} {
  func.func @_spatial_attention_kernel(%arg0: i32, %arg1: i32, %arg2: memref<1x4x128xf32, #tpu.memory_space<vmem>>, %arg3: memref<4x1xf32, #tpu.memory_space<vmem>>, %arg4: memref<1x4x128xf32, #tpu.memory_space<vmem>>) attributes {dimension_semantics = [#tpu.dimension_semantics<parallel>, #tpu.dimension_semantics<parallel>], iteration_bounds = array<i64: 2, 2>, scalar_prefetch = 0 : i64, scratch_operands = 0 : i64, tpu.core_type = #tpu.core_type<tc>, window_params = [{transform_indices = @transform_0, window_bounds = array<i64: 1, 4, 128>}, {pipeline_mode = #tpu.pipeline_mode<synchronous>, transform_indices = @transform_1, window_bounds = array<i64: 4, 1>}, {transform_indices = @transform_2, window_bounds = array<i64: 1, 4, 128>}]} {
    %c0 = arith.constant 0 : index
    %c0_0 = arith.constant 0 : index
    %c0_1 = arith.constant 0 : index
    %0 = vector.load %arg2[%c0, %c0_0, %c0_1] : memref<1x4x128xf32, #tpu.memory_space<vmem>>, vector<1x4x128xf32>
    %1 = vector.shape_cast %0 : vector<1x4x128xf32> to vector<4x128xf32>
    %c0_2 = arith.constant 0 : index
    %c0_3 = arith.constant 0 : index
    %2 = vector.load %arg3[%c0_2, %c0_3] : memref<4x1xf32, #tpu.memory_space<vmem>>, vector<4x1xf32>
    %3 = vector.broadcast %2 : vector<4x1xf32> to vector<4x128xf32>
    %4 = arith.mulf %1, %3 : vector<4x128xf32>
    %cst = arith.constant dense<0.000000e+00> : vector<128xf32>
    %5 = vector.multi_reduction <add>, %4, %cst [0] : vector<4x128xf32> to vector<128xf32>
    %6 = vector.shape_cast %5 : vector<128xf32> to vector<1x128xf32>
    %cst_4 = arith.constant 0.000000e+00 : f32
    %7 = vector.broadcast %cst_4 : f32 to vector<1x128xf32>
    %8 = arith.subf %7, %6 : vector<1x128xf32>
    %9 = math.exp %8 : vector<1x128xf32>
    %cst_5 = arith.constant 1.000000e+00 : f32
    %10 = vector.broadcast %cst_5 : f32 to vector<1x128xf32>
    %11 = arith.addf %10, %9 : vector<1x128xf32>
    %cst_6 = arith.constant 1.000000e+00 : f32
    %12 = vector.broadcast %cst_6 : f32 to vector<1x128xf32>
    %13 = arith.divf %12, %11 : vector<1x128xf32>
    %14 = vector.broadcast %13 : vector<1x128xf32> to vector<4x128xf32>
    %15 = arith.mulf %1, %14 : vector<4x128xf32>
    %c0_7 = arith.constant 0 : index
    %c0_8 = arith.constant 0 : index
    %c0_9 = arith.constant 0 : index
    %16 = vector.load %arg4[%c0_7, %c0_8, %c0_9] : memref<1x4x128xf32, #tpu.memory_space<vmem>>, vector<1x4x128xf32>
    %17 = vector.shape_cast %16 : vector<1x4x128xf32> to vector<4x128xf32>
    %18 = vector.shape_cast %15 : vector<4x128xf32> to vector<1x4x128xf32>
    tpu.vector_store %arg4[%c0_7, %c0_8, %c0_9], %18 {strides = array<i32>} : memref<1x4x128xf32, #tpu.memory_space<vmem>>, vector<1x4x128xf32>,
    return
  }
  func.func @transform_0(%arg0: i32, %arg1: i32) -> (i32, i32, i32) {
    %c0_i32 = arith.constant 0 : i32
    %c0_i32_0 = arith.constant 0 : i32
    return %arg0, %c0_i32, %arg1 : i32, i32, i32
  }
  func.func @transform_1(%arg0: i32, %arg1: i32) -> (i32, i32) {
    %c0_i32 = arith.constant 0 : i32
    %c0_i32_0 = arith.constant 0 : i32
    %c0_i32_1 = arith.constant 0 : i32
    return %c0_i32, %c0_i32_0 : i32, i32
  }
  func.func @transform_2(%arg0: i32, %arg1: i32) -> (i32, i32, i32) {
    %c0_i32 = arith.constant 0 : i32
    %c0_i32_0 = arith.constant 0 : i32
    return %arg0, %c0_i32, %arg1 : i32, i32, i32
  }
}

</mosaic_0001>

<bundles_post_ra>
// kernel: tpu_custom_call.1
= control target key start
LH: loop header
LB: loop body
LE: loop exit
PB: predicated region body
PF: predicated region fallthrough
CT: control target
= control target key end

     0   :  { %7 = vsyncpa [#allocation3], 0  ;;  %s704_s0 = inlined_call_operand.hbm [shape: f32[2,4,256], index: 0, kind: input, shape index: {}]   ;;  %s705_s1 = inlined_call_operand.vmem [shape: f32[4,1], index: 1, kind: input, shape index: {}]   ;;  %s706_s2 = inlined_call_operand.hbm [shape: f32[2,4,256], index: 2, kind: output, shape index: {}]  }
   0x1   :  { %9 = vsyncpa [#allocation3 + $0x1], 0 }
   0x2   :  { %10 = vsyncpa [#allocation4], 0 }
   0x3   :  { %12 = vsyncpa [#allocation4 + $0x1], 0  ;;  %s545_s9 = smov 0   ;;  %s547_s10 = smov 0  }
   0x4   :  { %s549_s11 = smov 0   ;;  %s551_s12 = smov 0  }
   0x5   :  { %s553_s13 = smov 0   ;;  %s555_s14 = smov 0  }
   0x6   :  { %s557_s15 = smov 0   ;;  %s559_s16 = smov 0  }
   0x7 LB: > { %s302_s17 = sadd.s32 4294967295, %s525_s16   ;;  %s303_s18 = sadd.s32 4294967294, %s525_s16   ;;  %s525_s16 = sphi %s559_s16, %s18_s16   ;;  %s521_s15 = sphi %s557_s15, %s719_s15   ;;  %s517_s14 = sphi %s555_s14, %s718_s14   ;;  %s513_s13 = sphi %s553_s13, %s717_s13   ;;  %s509_s12 = sphi %s551_s12, %s716_s12   ;;  %s505_s11 = sphi %s549_s11, %s715_s11   ;;  %s501_s10 = sphi %s547_s10, %s714_s10   ;;  %s497_s9 = sphi %s545_s9, %s713_s9  }
   0x8   : > { %s27_s19 = sadd.s32 1, %s517_s14  ;;  %s30_s20 = sadd.s32 1, %s521_s15 }
   0x9   : > { %p28_p0 = scmp.ge.s32.totalorder %s27_s19, 2  ;;  %s39_s21 = sadd.s32 1, %s505_s11 }
   0xa   : > { %p46_p1 = scmp.ne.s32.totalorder %s505_s11, %s501_s10  ;;  %p47_p2 = scmp.eq.s32.totalorder %s525_s16, 0 }
   0xb   : > { %s721_s19 = smov (%p28_p0, %s27_s19), 0  ;;  %s723_s20 = smov (!%p28_p0, %s30_s20), %s521_s15 }
   0xc   : > { %s35_s22 = ssub.s32 %s517_s14, %s721_s19  ;;  %p598_p3 = por %p47_p2, %p46_p1 }
   0xd   : > { %p32_p4 = scmp.ge.s32.totalorder %s723_s20, 2  ;;  %p52_p5 = scmp.ne.s32.totalorder %s501_s10, %s497_s9 }
   0xe   : > { %p53_p6 = scmp.eq.s32.totalorder %s302_s17, 0  ;;  %p99_p7 = scmp.eq.s32.totalorder %s302_s17, 3 }
   0xf   : > { %s725_s20 = smov (%p32_p4, %s723_s20), 0  ;;  %p105_p10 = scmp.eq.s32.totalorder %s303_s18, 3 }
  0x10   : > { %p606_p8 = por %p53_p6, %p52_p5  ;;  %p610_p9 = por %p99_p7, %p46_p1 }
  0x11   : > { %s34_s26 = ssub.s32 %s521_s15, %s725_s20  ;;  %p616_p12 = por %p105_p10, %p52_p5 }
  0x12   : > { %s36_s27 = sor.u32 %s35_s22, %s34_s26  ;;  %p329_p13 = scmp.lt.s32.totalorder %s525_s16, 4 }
  0x13   : > { %p37_p11 = scmp.eq.s32.totalorder %s36_s27, 0  ;;  %s128_s29 = sand.u32 1, %s505_s11  }
  0x14   : > { %s710_s28 = scalar_select %p616_p12, 1, 0 }
  0x15   : > { %s623_s30 = scalar_select %p37_p11, %s505_s11, %s39_s21  }
  0x16   : > { %s306_s3 = sshll.u32 %s128_s29, 2  ;;  %s307_s4 = sshll.u32 %s521_s15, 1 }
  0x17   : > { %s137_s5 = sadd.s32 %s517_s14, %s307_s4  ;;  %s132_s6 = scalar_lea.vmem [#allocation2], %s306_s3 }
  0x18   : > { %s141_s7 = sshll.u32 %s132_s6, 4  ;;  %s308_s8 = sshll.u32 %s137_s5, 6  ;;  %s142_s7 = int_to_ptr.vmem [resolvable:$true] %s141_s7 }
  0x19   : > { %s139_s22 = scalar_lea.hbm %s704_s0, %s308_s8  ;;  %p632_p0 = pnand %p329_p13, %p598_p3 }
  0x1a   : > { %p309_p1 = scmp.ge.s32.totalorder %s525_s16, 1  ;;  %p146_p2 = scmp.lt.s32.totalorder %s525_s16, 5 }
  0x1b   : > { %s129_s21 = scalar_lea.sflag [#allocation3], %s128_s29  ;;  %p403_p4 = pneg %p632_p0 }
  0x1c   : > { %s414_s27 = scalar_lea.vmem %s142_s7, 64  ;;  %s527_s3 = smov [#allocation2]  }
  0x1d   : > { %p415_p5 = scmp.ne.s32.totalorder %s142_s7, %s414_s27  ;;  %s419_s4 = sshll.u32 %s527_s3, 4  ;;  %s420_s4 = int_to_ptr.vmem [resolvable:$false] %s419_s4 }
  0x1e   : > { %s421_s5 = scalar_lea.vmem %s420_s4, 128  ;;  %p422_p10 = scmp.lt.s32.totalorder %s142_s7, %s420_s4 }
  0x1f   : > { %p417_p6 = pnand %p415_p5, %p403_p4  ;;  %p423_p11 = scmp.lt.s32.totalorder %s421_s5, %s414_s27 }
  0x21   : > { %p418_p7 = pneg %p417_p6  ;;  %p424_p3 = por %p423_p11, %p422_p10 }
  0x23   : > { %p425_p13 = pnand %p424_p3, %p418_p7 }
  0x25   : > { %428 = shalt.err (!%p425_p13)
}
  0x26   : > { %324 = dma.hbm_to_vmem [thread:$0]  (!%p632_p0), %s139_s22, 64, %s142_s7, %s129_s21  }
  0x27   : > { %p147_p12 = pnand %p309_p1, %p146_p2 }
  0x28   : > { %s647_s23 = sand.u32 (!%p147_p12), 1, %s501_s10  }
  0x29   : > { %150 = sbr.rel (%p147_p12) target bundleno = 237 (0xed), region = 28  ;;  %s310_s29 = sshll.u32 (!%p147_p12), %s647_s23, 2 }
  0x2a   : > { %s153_s6 = scalar_lea.sflag (!%p147_p12), [#allocation3], %s647_s23  ;;  %s156_s8 = scalar_lea.vmem (!%p147_p12), [#allocation2], %s310_s29 }
  0x2e   : > { %488 = dma.done.wait (%p606_p8), %s153_s6, 64  }
  0x2f   : > { %490 = vsyncadd (%p606_p8), %s153_s6, 4294967232  ;;  %v528_v0 = vmov 0   ;;  %v178_v1 = vld [vmem:[%s705_s1] sm:$0xf]  ;;  %vm185_vm0 = vcmask 1043456   ;;  %s313_s24 = sshll.u32 %s513_s13, 1 }
  0x30   : > { %396 = vset.pattern.permute.xlu0 %v528_v0  ;;  %v177_v2 = vld [vmem:[%s156_s8] sm:$0xf]  ;;  %s213_s18 = sadd.s32 %s509_s12, %s313_s24  ;;  %s176_s26 = scalar_lea.vmem [#allocation5], %s310_s29 }
  0x31   : > { %181 = vperm.xlu0 %396, %v178_v1   ;;  %s314_s22 = sshll.u32 %s213_s18, 6  ;;  %s217_s21 = sshll.u32 %s176_s26, 4  ;;  %s218_s21 = int_to_ptr.vmem [resolvable:$true] %s217_s21 }
  0x32   : > { %s215_s4 = scalar_lea.hbm %s706_s2, %s314_s22  ;;  %s202_s5 = scalar_lea.sflag [#allocation4], %s647_s23 }
  0x33   : > { %s429_s6 = scalar_lea.vmem %s218_s21, 64  ;;  %s529_s8 = smov [#allocation5]  }
  0x34   : > { %p430_p8 = scmp.ne.s32.totalorder %s218_s21, %s429_s6  ;;  %s433_s13 = sshll.u32 %s529_s8, 4  ;;  %s434_s13 = int_to_ptr.vmem [resolvable:$false] %s433_s13 }
  0x35   : > { %s435_s12 = scalar_lea.vmem %s434_s13, 128  ;;  %p436_p1 = scmp.lt.s32.totalorder %s218_s21, %s434_s13 }
  0x36   : > { %p431_p12 = pnand %p430_p8, %p610_p9  ;;  %p437_p2 = scmp.lt.s32.totalorder %s435_s12, %s429_s6 }
  0x38   : > { %p432_p0 = pneg %p431_p12  ;;  %p438_p4 = por %p437_p2, %p436_p1 }
  0x3a   : > { %p439_p5 = pnand %p438_p4, %p432_p0 }
  0xac   : > { %v182_v3 = vpop.permute.xlu0 %181 }
  0xad   : > { %v184_v4 = vmul.f32 %v182_v3, %v177_v2 }
  0xaf   : > { %v186_v5 = vsel %vm185_vm0, %v184_v4, 0.0 }
  0xb0   : > { %v187_v6 = vrot.slane %v186_v5, 4 }
  0xb2   : > { %v188_v7 = vadd.f32 %v187_v6, %v186_v5 }
  0xb4   : > { %v189_v8 = vrot.slane %v188_v7, 2 }
  0xb6   : > { %v190_v9 = vadd.f32 %v189_v8, %v188_v7 }
  0xb8   : > { %v191_v10 = vrot.slane %v190_v9, 1 }
  0xba   : > { %v192_v11 = vadd.f32 %v191_v10, %v190_v9 }
  0xbc   : > { %v193_v12 = vsub.f32 0.0, %v192_v11 }
  0xbe   : > { %v194_v13 = vmul.f32 1.442695, %v193_v12 }
  0xc0   : > { %397 = vpow2.f32 %v194_v13 }
  0xcd   : > { %v398_v14 = vpop.eup %397 }
  0xce   : > { %v196_v15 = vadd.f32 1.0, %v398_v14 }
  0xd0   : > { %399 = vrcp.f32 %v196_v15 }
  0xdd   : > { %v400_v16 = vpop.eup %399 }
  0xde   : > { %v199_v17 = vmul.f32 %v400_v16, %v177_v2 }
  0xe0   : > { %200 = vst [vmem:[%s176_s26] sm:$0xf] %v199_v17 }
  0xe1   : > { %442 = shalt.err (!%p439_p5)
}
  0xe2   : > { %s443_s29 = scalar_lea.hbm %s215_s4, 64  ;;  %s447_s17 = scalar_lea.hbm %s706_s2, 256 }
  0xe3   : > { %p444_p6 = scmp.ne.s32.totalorder %s215_s4, %s443_s29  ;;  %p448_p11 = scmp.lt.s32.totalorder %s215_s4, %s706_s2 }
  0xe4   : > { %p449_p3 = scmp.lt.s32.totalorder %s447_s17, %s443_s29 }
  0xe5   : > { %p445_p7 = pnand %p444_p6, %p610_p9 }
  0xe6   : > { %p450_p13 = por %p449_p3, %p448_p11 }
  0xe7   : > { %p446_p10 = pneg %p445_p7 }
  0xe9   : > { %p451_p8 = pnand %p450_p13, %p446_p10 }
  0xeb   : > { %454 = shalt.err (!%p451_p8)
}
  0xec   : > { %319 = dma.vmem_to_hbm [thread:$0]  (%p610_p9), %s218_s21, 64, %s215_s4, %s202_s5  }
  0xed PF: > { %p330_p12 = scmp.ge.s32.totalorder %s525_s16, 2  ;;  %s229_s22 = sand.u32 1, %s497_s9  }
  0xee   : > { %p712_p0 = scmp.ne.s32.totalorder %s710_s28, 0  ;;  %s230_s26 = scalar_lea.sflag [#allocation4], %s229_s22 }
  0xf0   : > { %p326_p1 = pnand %p330_p12, %p712_p0 }
  0xf2   : > { %p327_p2 = pneg %p326_p1 }
  0xf4   : > { %492 = dma.done.wait (%p327_p2), %s230_s26, 64  }
  0xf5   : > { %494 = vsyncadd (%p327_p2), %s230_s26, 4294967232  ;;  %s18_s16 = sadd.s32 1, %s525_s16   ;;  %s713_s9 = smov %s501_s10 }
  0xf6   : > { %p15_p4 = scmp.ge.s32.totalorder %s18_s16, 6   ;;  %s714_s10 = smov %s505_s11 }
  0xf7   : > { %s715_s11 = smov %s623_s30  ;;  %s716_s12 = smov %s517_s14 }
  0xf8   : > { %s717_s13 = smov %s521_s15  ;;  %s718_s14 = smov %s721_s19 }
  0xf9   : > { %s719_s15 = smov %s725_s20  ;;  %17 = sbr.rel (!%p15_p4) target bundleno = 7 (0x7), region = 73 }
  0xfe   :  { %235 = vsyncpa [#allocation3], 1 }
  0xff   :  { %237 = vsyncpa [#allocation3 + $0x1], 1 }
 0x100   :  { %238 = vsyncpa [#allocation4], 1 }
 0x101   :  { %240 = vsyncpa [#allocation4 + $0x1], 1 }

</bundles_post_ra>
